<compile_context>
chip_gen: v7x
topology: tpu7x:2x2x1
jax: 0.10.0
libtpu: 0.0.40
codegen_flags: <defaults>
</compile_context>

<pallas_src>
import functools

import jax
import jax.numpy as jnp
from jax import lax
from jax.experimental import pallas as pl
from jax.experimental.pallas import tpu as pltpu


def _flash_head_kernel(xq_ref, xkv_ref, wq_ref, wkv_ref, o_ref,
                       q_sc, m_sc, l_sc, acc_sc,
                       *, scale, tq, tk, H):
    # xq_ref:  (1, tq, C)   query-tile slice of x
    # xkv_ref: (1, tk, C)   kv-tile slice of x
    # wq_ref:  (C, H)       query projection
    # wkv_ref: (C, 2H)      fused key|value projection
    # o_ref:   (1, tq, H)
    # q_sc: (tq, H) in x dtype;  m_sc/l_sc: (tq, 1) f32;  acc_sc: (tq, H) f32
    qi = pl.program_id(1)
    ki = pl.program_id(2)
    nk = pl.num_programs(2)

    q_start = qi * tq
    k_start = ki * tk

    @pl.when(ki == 0)
    def _init():
        # Project q once per query tile; fold the 1/sqrt(C) scale into q
        # (T*H multiplies instead of T*T on the scores).
        q = jnp.dot(xq_ref[0], wq_ref[...], preferred_element_type=jnp.float32)
        q_sc[...] = (q * scale).astype(q_sc.dtype)
        m_sc[...] = jnp.full_like(m_sc, -jnp.inf)
        l_sc[...] = jnp.zeros_like(l_sc)
        acc_sc[...] = jnp.zeros_like(acc_sc)

    def _scores_and_values():
        # Fused K|V projection for this kv tile; keep matmul operands in the
        # input dtype (MXU native rate), accumulate in f32.
        kv = jnp.dot(xkv_ref[0], wkv_ref[...], preferred_element_type=jnp.float32)
        k = kv[:, :H].astype(xkv_ref.dtype)          # (tk, H)
        v = kv[:, H:].astype(xkv_ref.dtype)          # (tk, H)
        s = jnp.einsum('qd,kd->qk', q_sc[...], k,
                       preferred_element_type=jnp.float32)   # (tq, tk)
        return s, v

    def _online_update(s, v):
        m_prev = m_sc[...]
        m_new = jnp.maximum(m_prev, jnp.max(s, axis=-1, keepdims=True))
        alpha = jnp.exp(m_prev - m_new)
        p = jnp.exp(s - m_new)
        l_sc[...] = alpha * l_sc[...] + jnp.sum(p, axis=-1, keepdims=True)
        acc_sc[...] = alpha * acc_sc[...] + jnp.dot(
            p.astype(v.dtype), v, preferred_element_type=jnp.float32)
        m_sc[...] = m_new

    # --- diagonal-crossing tiles: apply the causal mask -----------------------
    @pl.when(jnp.logical_and(k_start <= q_start + (tq - 1),
                             k_start + (tk - 1) > q_start))
    def _masked_tile():
        s, v = _scores_and_values()
        row = q_start + lax.broadcasted_iota(jnp.int32, (tq, tk), 0)
        col = k_start + lax.broadcasted_iota(jnp.int32, (tq, tk), 1)
        s = jnp.where(col <= row, s, -jnp.inf)
        _online_update(s, v)

    # --- strictly-lower tiles: no mask needed ---------------------------------
    @pl.when(k_start + (tk - 1) <= q_start)
    def _unmasked_tile():
        s, v = _scores_and_values()
        _online_update(s, v)

    # Tiles entirely above the diagonal (k_start > q_start + tq - 1): compute skipped.

    @pl.when(ki == nk - 1)
    def _finalize():
        inv_l = pl.reciprocal(l_sc[...], approx=True)   # EUP vrcp
        o_ref[0] = (acc_sc[...] * inv_l).astype(o_ref.dtype)


def _pick_tile(T):
    """Biggest MXU/lane-friendly tile that divides T; fall back to full T."""
    for t in (512, 256, 128):
        if T > t and T % t == 0:
            return t
    return T


def head_attention(x, w_key, w_query, w_value):
    """x: (B, T, C); w_*: (head_size, C) as in nn.Linear.weight. Returns (B, T, head_size)."""
    B, T, C = x.shape
    H = w_key.shape[0]
    scale = float(C) ** -0.5        # matches the PyTorch reference (C = n_embd)

    tq = _pick_tile(T)
    tk = _pick_tile(T)
    assert T % tq == 0 and T % tk == 0

    # nn.Linear computes x @ W.T — pre-transpose; fuse K|V into one weight (glue).
    wq = jnp.asarray(w_query.T, dtype=x.dtype)                                 # (C, H)
    wkv = jnp.concatenate([w_key.T, w_value.T], axis=1).astype(x.dtype)        # (C, 2H)

    kernel = functools.partial(_flash_head_kernel, scale=scale, tq=tq, tk=tk, H=H)

    return pl.pallas_call(
        kernel,
        out_shape=jax.ShapeDtypeStruct((B, T, H), x.dtype),
        grid_spec=pltpu.PrefetchScalarGridSpec(
            num_scalar_prefetch=0,
            grid=(B, T // tq, T // tk),
            in_specs=[
                pl.BlockSpec((1, tq, C), lambda b, qi, ki: (b, qi, 0)),   # x (query tile)
                pl.BlockSpec((1, tk, C), lambda b, qi, ki: (b, ki, 0)),   # x (kv tile)
                pl.BlockSpec((C, H), lambda b, qi, ki: (0, 0)),           # Wq
                pl.BlockSpec((C, 2 * H), lambda b, qi, ki: (0, 0)),       # Wk|Wv fused
            ],
            out_specs=pl.BlockSpec((1, tq, H), lambda b, qi, ki: (b, qi, 0)),
            scratch_shapes=[
                pltpu.VMEM((tq, H), x.dtype),       # q (pre-scaled, native dtype)
                pltpu.VMEM((tq, 1), jnp.float32),   # running max m
                pltpu.VMEM((tq, 1), jnp.float32),   # running denom l
                pltpu.VMEM((tq, H), jnp.float32),   # output accumulator
            ],
        ),
        compiler_params=pltpu.CompilerParams(
            dimension_semantics=("parallel", "parallel", "arbitrary"),
            vmem_limit_bytes=48 * 1024 * 1024,      # headroom under v7x's 64 MiB VMEM
        ),
    )(x, x, wq, wkv)


def head_reference(x, w_key, w_query, w_value):
    """Pure-JAX reference matching the PyTorch forward."""
    B, T, C = x.shape
    k = x @ w_key.T
    q = x @ w_query.T
    v = x @ w_value.T
    wei = (q @ jnp.swapaxes(k, -2, -1)) * (C ** -0.5)
    mask = jnp.tril(jnp.ones((T, T), dtype=bool))
    wei = jnp.where(mask, wei, -jnp.inf)
    wei = jax.nn.softmax(wei, axis=-1)
    return wei @ v


if __name__ == "__main__":
    # Small shapes consistent with the module: batch=2, seq=8, n_embd=32, head_size=16.
    B, T, n_embd, head_size = 2, 8, 32, 16

    key = jax.random.PRNGKey(0)
    kx, kk, kq, kv = jax.random.split(key, 4)

    x = jax.random.normal(kx, (B, T, n_embd), dtype=jnp.float32)
    # Deterministic parameter init (nn.Linear weight shape: (out_features, in_features)).
    # NOTE: the PyTorch __init__ overwrites self.query and never defines self.value,
    # but forward() calls self.value(x); we instantiate a value projection of the
    # shape the forward implies (n_embd -> head_size, bias=False).
    w_key_p = jax.random.normal(kk, (head_size, n_embd), dtype=jnp.float32) * 0.1
    w_query_p = jax.random.normal(kq, (head_size, n_embd), dtype=jnp.float32) * 0.1
    w_value_p = jax.random.normal(kv, (head_size, n_embd), dtype=jnp.float32) * 0.1

    # Single-tile path (T=8 -> tq=tk=T).
    out = head_attention(x, w_key_p, w_query_p, w_value_p)
    out = jax.block_until_ready(out)
    ref = head_reference(x, w_key_p, w_query_p, w_value_p)
    assert out.shape == (B, T, head_size)
    # Tolerance accounts for pl.reciprocal(approx=True) in the softmax normalization.
    assert jnp.allclose(out, ref, atol=2e-2, rtol=2e-2), "mismatch vs reference (small)"

    # Multi-tile path (T=256 -> tq=tk=128) exercising masked / unmasked / skipped
    # tiles and the online-softmax accumulation across the KV grid axis.
    T2 = 256
    x2 = jax.random.normal(jax.random.PRNGKey(1), (B, T2, n_embd), dtype=jnp.float32)
    out2 = jax.block_until_ready(head_attention(x2, w_key_p, w_query_p, w_value_p))
    ref2 = head_reference(x2, w_key_p, w_query_p, w_value_p)
    assert out2.shape == (B, T2, head_size)
    assert jnp.allclose(out2, ref2, atol=2e-2, rtol=2e-2), "mismatch vs reference (tiled)"

    print("KERNEL_OK")
</pallas_src>

<mosaic_0001>
module attributes {stable_mosaic.version = 11 : i64} {
  func.func @_flash_head_kernel(%arg0: i32, %arg1: i32, %arg2: i32, %arg3: memref<1x8x32xf32, #tpu.memory_space<vmem>>, %arg4: memref<1x8x32xf32, #tpu.memory_space<vmem>>, %arg5: memref<32x16xf32, #tpu.memory_space<vmem>>, %arg6: memref<32x32xf32, #tpu.memory_space<vmem>>, %arg7: memref<1x8x16xf32, #tpu.memory_space<vmem>>, %arg8: memref<8x16xf32, #tpu.memory_space<vmem>>, %arg9: memref<8x1xf32, #tpu.memory_space<vmem>>, %arg10: memref<8x1xf32, #tpu.memory_space<vmem>>, %arg11: memref<8x16xf32, #tpu.memory_space<vmem>>) attributes {dimension_semantics = [#tpu.dimension_semantics<parallel>, #tpu.dimension_semantics<parallel>, #tpu.dimension_semantics<arbitrary>], iteration_bounds = array<i64: 2, 1, 1>, scalar_prefetch = 0 : i64, scratch_operands = 4 : i64, tpu.core_type = #tpu.core_type<tc>, window_params = [{transform_indices = @transform_0, window_bounds = array<i64: 1, 8, 32>}, {transform_indices = @transform_1, window_bounds = array<i64: 1, 8, 32>}, {pipeline_mode = #tpu.pipeline_mode<synchronous>, transform_indices = @transform_2, window_bounds = array<i64: 32, 16>}, {pipeline_mode = #tpu.pipeline_mode<synchronous>, transform_indices = @transform_3, window_bounds = array<i64: 32, 32>}, {transform_indices = @transform_4, window_bounds = array<i64: 1, 8, 16>}]} {
    %c8_i32 = arith.constant 8 : i32
    %0 = arith.muli %arg1, %c8_i32 : i32
    %c8_i32_0 = arith.constant 8 : i32
    %1 = arith.muli %arg2, %c8_i32_0 : i32
    %c0_i32 = arith.constant 0 : i32
    %2 = arith.cmpi eq, %arg2, %c0_i32 : i32
    %3 = arith.extui %2 : i1 to i32
    %c0_i32_1 = arith.constant 0 : i32
    %4 = arith.cmpi ne, %3, %c0_i32_1 : i32
    scf.if %4 {
      %c0 = arith.constant 0 : index
      %c0_8 = arith.constant 0 : index
      %c0_9 = arith.constant 0 : index
      %19 = vector.load %arg3[%c0, %c0_8, %c0_9] : memref<1x8x32xf32, #tpu.memory_space<vmem>>, vector<1x8x32xf32>
      %20 = vector.shape_cast %19 : vector<1x8x32xf32> to vector<8x32xf32>
      %c0_10 = arith.constant 0 : index
      %c0_11 = arith.constant 0 : index
      %21 = vector.load %arg5[%c0_10, %c0_11] : memref<32x16xf32, #tpu.memory_space<vmem>>, vector<32x16xf32>
      %cst = arith.constant dense<0.000000e+00> : vector<8x16xf32>
      %22 = tpu.matmul %20, %21, %cst {dimension_numbers = #tpu.dot_dimension_numbers<[1], [0], [0], [1], [0, 0, 1, 1], [], []>} : vector<8x32xf32>, vector<32x16xf32>, vector<8x16xf32> -> vector<8x16xf32>
      %cst_12 = arith.constant 0.176776692 : f32
      %23 = vector.broadcast %cst_12 : f32 to vector<8x16xf32>
      %24 = arith.mulf %22, %23 : vector<8x16xf32>
      %c0_13 = arith.constant 0 : index
      %c0_14 = arith.constant 0 : index
      %25 = vector.load %arg8[%c0_13, %c0_14] : memref<8x16xf32, #tpu.memory_space<vmem>>, vector<8x16xf32>
      tpu.vector_store %arg8[%c0_13, %c0_14], %24 {strides = array<i32>} : memref<8x16xf32, #tpu.memory_space<vmem>>, vector<8x16xf32>,
      %cst_15 = arith.constant 0xFF800000 : f32
      %26 = vector.broadcast %cst_15 : f32 to vector<8x1xf32>
      %c0_16 = arith.constant 0 : index
      %c0_17 = arith.constant 0 : index
      %27 = vector.load %arg9[%c0_16, %c0_17] : memref<8x1xf32, #tpu.memory_space<vmem>>, vector<8x1xf32>
      tpu.vector_store %arg9[%c0_16, %c0_17], %26 {strides = array<i32>} : memref<8x1xf32, #tpu.memory_space<vmem>>, vector<8x1xf32>,
      %cst_18 = arith.constant 0.000000e+00 : f32
      %28 = vector.broadcast %cst_18 : f32 to vector<8x1xf32>
      %c0_19 = arith.constant 0 : index
      %c0_20 = arith.constant 0 : index
      %29 = vector.load %arg10[%c0_19, %c0_20] : memref<8x1xf32, #tpu.memory_space<vmem>>, vector<8x1xf32>
      tpu.vector_store %arg10[%c0_19, %c0_20], %28 {strides = array<i32>} : memref<8x1xf32, #tpu.memory_space<vmem>>, vector<8x1xf32>,
      %cst_21 = arith.constant 0.000000e+00 : f32
      %30 = vector.broadcast %cst_21 : f32 to vector<8x16xf32>
      %c0_22 = arith.constant 0 : index
      %c0_23 = arith.constant 0 : index
      %31 = vector.load %arg11[%c0_22, %c0_23] : memref<8x16xf32, #tpu.memory_space<vmem>>, vector<8x16xf32>
      tpu.vector_store %arg11[%c0_22, %c0_23], %30 {strides = array<i32>} : memref<8x16xf32, #tpu.memory_space<vmem>>, vector<8x16xf32>,
    } else {
    }
    %c7_i32 = arith.constant 7 : i32
    %5 = arith.addi %0, %c7_i32 : i32
    %6 = arith.cmpi sle, %1, %5 : i32
    %c7_i32_2 = arith.constant 7 : i32
    %7 = arith.addi %1, %c7_i32_2 : i32
    %8 = arith.cmpi sgt, %7, %0 : i32
    %9 = arith.andi %6, %8 : i1
    %10 = arith.extui %9 : i1 to i32
    %c0_i32_3 = arith.constant 0 : i32
    %11 = arith.cmpi ne, %10, %c0_i32_3 : i32
    scf.if %11 {
      %c0 = arith.constant 0 : index
      %c0_8 = arith.constant 0 : index
      %c0_9 = arith.constant 0 : index
      %19 = vector.load %arg4[%c0, %c0_8, %c0_9] : memref<1x8x32xf32, #tpu.memory_space<vmem>>, vector<1x8x32xf32>
      %20 = vector.shape_cast %19 : vector<1x8x32xf32> to vector<8x32xf32>
      %c0_10 = arith.constant 0 : index
      %c0_11 = arith.constant 0 : index
      %21 = vector.load %arg6[%c0_10, %c0_11] : memref<32x32xf32, #tpu.memory_space<vmem>>, vector<32x32xf32>
      %cst = arith.constant dense<0.000000e+00> : vector<8x32xf32>
      %22 = tpu.matmul %20, %21, %cst {dimension_numbers = #tpu.dot_dimension_numbers<[1], [0], [0], [1], [0, 0, 1, 1], [], []>} : vector<8x32xf32>, vector<32x32xf32>, vector<8x32xf32> -> vector<8x32xf32>
      %23 = vector.extract_strided_slice %22 {offsets = [0, 0], sizes = [8, 16], strides = [1, 1]} : vector<8x32xf32> to vector<8x16xf32>
      %24 = vector.extract_strided_slice %22 {offsets = [0, 16], sizes = [8, 16], strides = [1, 1]} : vector<8x32xf32> to vector<8x16xf32>
      %c0_12 = arith.constant 0 : index
      %c0_13 = arith.constant 0 : index
      %25 = vector.load %arg8[%c0_12, %c0_13] : memref<8x16xf32, #tpu.memory_space<vmem>>, vector<8x16xf32>
      "tpu.trace_start"() <{level = 10 : i32, message = "qd,kd->qk"}> : () -> ()
      %cst_14 = arith.constant dense<0.000000e+00> : vector<8x8xf32>
      %26 = tpu.matmul %25, %23, %cst_14 {dimension_numbers = #tpu.dot_dimension_numbers<[1], [1], [0], [0], [0, 0, 1, 0], [], []>} : vector<8x16xf32>, vector<8x16xf32>, vector<8x8xf32> -> vector<8x8xf32>
      "tpu.trace_stop"() : () -> ()
      %27 = tpu.iota {dimensions = array<i32: 0>} : vector<8x8xi32>
      %28 = vector.broadcast %0 : i32 to vector<8x8xi32>
      %29 = arith.addi %28, %27 : vector<8x8xi32>
      %30 = tpu.iota {dimensions = array<i32: 1>} : vector<8x8xi32>
      %31 = vector.broadcast %1 : i32 to vector<8x8xi32>
      %32 = arith.addi %31, %30 : vector<8x8xi32>
      %33 = arith.cmpi sle, %32, %29 : vector<8x8xi32>
      %cst_15 = arith.constant 0xFF800000 : f32
      %34 = vector.broadcast %cst_15 : f32 to vector<8x8xf32>
      %35 = arith.select %33, %26, %34 : vector<8x8xi1>, vector<8x8xf32>
      %c0_16 = arith.constant 0 : index
      %c0_17 = arith.constant 0 : index
      %36 = vector.load %arg9[%c0_16, %c0_17] : memref<8x1xf32, #tpu.memory_space<vmem>>, vector<8x1xf32>
      %cst_18 = arith.constant dense<0xFF800000> : vector<8xf32>
      %37 = vector.multi_reduction <maximumf>, %35, %cst_18 [1] : vector<8x8xf32> to vector<8xf32>
      %38 = vector.shape_cast %37 : vector<8xf32> to vector<8x1xf32>
      %39 = arith.maximumf %36, %38 : vector<8x1xf32>
      %40 = arith.subf %36, %39 : vector<8x1xf32>
      %41 = math.exp %40 : vector<8x1xf32>
      %42 = vector.broadcast %39 : vector<8x1xf32> to vector<8x8xf32>
      %43 = arith.subf %35, %42 : vector<8x8xf32>
      %44 = math.exp %43 : vector<8x8xf32>
      %c0_19 = arith.constant 0 : index
      %c0_20 = arith.constant 0 : index
      %45 = vector.load %arg10[%c0_19, %c0_20] : memref<8x1xf32, #tpu.memory_space<vmem>>, vector<8x1xf32>
      %46 = arith.mulf %41, %45 : vector<8x1xf32>
      %cst_21 = arith.constant dense<0.000000e+00> : vector<8xf32>
      %47 = vector.multi_reduction <add>, %44, %cst_21 [1] : vector<8x8xf32> to vector<8xf32>
      %48 = vector.shape_cast %47 : vector<8xf32> to vector<8x1xf32>
      %49 = arith.addf %46, %48 : vector<8x1xf32>
      %c0_22 = arith.constant 0 : index
      %c0_23 = arith.constant 0 : index
      %50 = vector.load %arg10[%c0_22, %c0_23] : memref<8x1xf32, #tpu.memory_space<vmem>>, vector<8x1xf32>
      tpu.vector_store %arg10[%c0_22, %c0_23], %49 {strides = array<i32>} : memref<8x1xf32, #tpu.memory_space<vmem>>, vector<8x1xf32>,
      %c0_24 = arith.constant 0 : index
      %c0_25 = arith.constant 0 : index
      %51 = vector.load %arg11[%c0_24, %c0_25] : memref<8x16xf32, #tpu.memory_space<vmem>>, vector<8x16xf32>
      %52 = vector.broadcast %41 : vector<8x1xf32> to vector<8x16xf32>
      %53 = arith.mulf %52, %51 : vector<8x16xf32>
      %cst_26 = arith.constant dense<0.000000e+00> : vector<8x16xf32>
      %54 = tpu.matmul %44, %24, %cst_26 {dimension_numbers = #tpu.dot_dimension_numbers<[1], [0], [0], [1], [0, 0, 1, 1], [], []>} : vector<8x8xf32>, vector<8x16xf32>, vector<8x16xf32> -> vector<8x16xf32>
      %55 = arith.addf %53, %54 : vector<8x16xf32>
      %c0_27 = arith.constant 0 : index
      %c0_28 = arith.constant 0 : index
      %56 = vector.load %arg11[%c0_27, %c0_28] : memref<8x16xf32, #tpu.memory_space<vmem>>, vector<8x16xf32>
      tpu.vector_store %arg11[%c0_27, %c0_28], %55 {strides = array<i32>} : memref<8x16xf32, #tpu.memory_space<vmem>>, vector<8x16xf32>,
      %c0_29 = arith.constant 0 : index
      %c0_30 = arith.constant 0 : index
      %57 = vector.load %arg9[%c0_29, %c0_30] : memref<8x1xf32, #tpu.memory_space<vmem>>, vector<8x1xf32>
      tpu.vector_store %arg9[%c0_29, %c0_30], %39 {strides = array<i32>} : memref<8x1xf32, #tpu.memory_space<vmem>>, vector<8x1xf32>,
    } else {
    }
    %c7_i32_4 = arith.constant 7 : i32
    %12 = arith.addi %1, %c7_i32_4 : i32
    %13 = arith.cmpi sle, %12, %0 : i32
    %14 = arith.extui %13 : i1 to i32
    %c0_i32_5 = arith.constant 0 : i32
    %15 = arith.cmpi ne, %14, %c0_i32_5 : i32
    scf.if %15 {
      %c0 = arith.constant 0 : index
      %c0_8 = arith.constant 0 : index
      %c0_9 = arith.constant 0 : index
      %19 = vector.load %arg4[%c0, %c0_8, %c0_9] : memref<1x8x32xf32, #tpu.memory_space<vmem>>, vector<1x8x32xf32>
      %20 = vector.shape_cast %19 : vector<1x8x32xf32> to vector<8x32xf32>
      %c0_10 = arith.constant 0 : index
      %c0_11 = arith.constant 0 : index
      %21 = vector.load %arg6[%c0_10, %c0_11] : memref<32x32xf32, #tpu.memory_space<vmem>>, vector<32x32xf32>
      %cst = arith.constant dense<0.000000e+00> : vector<8x32xf32>
      %22 = tpu.matmul %20, %21, %cst {dimension_numbers = #tpu.dot_dimension_numbers<[1], [0], [0], [1], [0, 0, 1, 1], [], []>} : vector<8x32xf32>, vector<32x32xf32>, vector<8x32xf32> -> vector<8x32xf32>
      %23 = vector.extract_strided_slice %22 {offsets = [0, 0], sizes = [8, 16], strides = [1, 1]} : vector<8x32xf32> to vector<8x16xf32>
      %24 = vector.extract_strided_slice %22 {offsets = [0, 16], sizes = [8, 16], strides = [1, 1]} : vector<8x32xf32> to vector<8x16xf32>
      %c0_12 = arith.constant 0 : index
      %c0_13 = arith.constant 0 : index
      %25 = vector.load %arg8[%c0_12, %c0_13] : memref<8x16xf32, #tpu.memory_space<vmem>>, vector<8x16xf32>
      "tpu.trace_start"() <{level = 10 : i32, message = "qd,kd->qk"}> : () -> ()
      %cst_14 = arith.constant dense<0.000000e+00> : vector<8x8xf32>
      %26 = tpu.matmul %25, %23, %cst_14 {dimension_numbers = #tpu.dot_dimension_numbers<[1], [1], [0], [0], [0, 0, 1, 0], [], []>} : vector<8x16xf32>, vector<8x16xf32>, vector<8x8xf32> -> vector<8x8xf32>
      "tpu.trace_stop"() : () -> ()
      %c0_15 = arith.constant 0 : index
      %c0_16 = arith.constant 0 : index
      %27 = vector.load %arg9[%c0_15, %c0_16] : memref<8x1xf32, #tpu.memory_space<vmem>>, vector<8x1xf32>
      %cst_17 = arith.constant dense<0xFF800000> : vector<8xf32>
      %28 = vector.multi_reduction <maximumf>, %26, %cst_17 [1] : vector<8x8xf32> to vector<8xf32>
      %29 = vector.shape_cast %28 : vector<8xf32> to vector<8x1xf32>
      %30 = arith.maximumf %27, %29 : vector<8x1xf32>
      %31 = arith.subf %27, %30 : vector<8x1xf32>
      %32 = math.exp %31 : vector<8x1xf32>
      %33 = vector.broadcast %30 : vector<8x1xf32> to vector<8x8xf32>
      %34 = arith.subf %26, %33 : vector<8x8xf32>
      %35 = math.exp %34 : vector<8x8xf32>
      %c0_18 = arith.constant 0 : index
      %c0_19 = arith.constant 0 : index
      %36 = vector.load %arg10[%c0_18, %c0_19] : memref<8x1xf32, #tpu.memory_space<vmem>>, vector<8x1xf32>
      %37 = arith.mulf %32, %36 : vector<8x1xf32>
      %cst_20 = arith.constant dense<0.000000e+00> : vector<8xf32>
      %38 = vector.multi_reduction <add>, %35, %cst_20 [1] : vector<8x8xf32> to vector<8xf32>
      %39 = vector.shape_cast %38 : vector<8xf32> to vector<8x1xf32>
      %40 = arith.addf %37, %39 : vector<8x1xf32>
      %c0_21 = arith.constant 0 : index
      %c0_22 = arith.constant 0 : index
      %41 = vector.load %arg10[%c0_21, %c0_22] : memref<8x1xf32, #tpu.memory_space<vmem>>, vector<8x1xf32>
      tpu.vector_store %arg10[%c0_21, %c0_22], %40 {strides = array<i32>} : memref<8x1xf32, #tpu.memory_space<vmem>>, vector<8x1xf32>,
      %c0_23 = arith.constant 0 : index
      %c0_24 = arith.constant 0 : index
      %42 = vector.load %arg11[%c0_23, %c0_24] : memref<8x16xf32, #tpu.memory_space<vmem>>, vector<8x16xf32>
      %43 = vector.broadcast %32 : vector<8x1xf32> to vector<8x16xf32>
      %44 = arith.mulf %43, %42 : vector<8x16xf32>
      %cst_25 = arith.constant dense<0.000000e+00> : vector<8x16xf32>
      %45 = tpu.matmul %35, %24, %cst_25 {dimension_numbers = #tpu.dot_dimension_numbers<[1], [0], [0], [1], [0, 0, 1, 1], [], []>} : vector<8x8xf32>, vector<8x16xf32>, vector<8x16xf32> -> vector<8x16xf32>
      %46 = arith.addf %44, %45 : vector<8x16xf32>
      %c0_26 = arith.constant 0 : index
      %c0_27 = arith.constant 0 : index
      %47 = vector.load %arg11[%c0_26, %c0_27] : memref<8x16xf32, #tpu.memory_space<vmem>>, vector<8x16xf32>
      tpu.vector_store %arg11[%c0_26, %c0_27], %46 {strides = array<i32>} : memref<8x16xf32, #tpu.memory_space<vmem>>, vector<8x16xf32>,
      %c0_28 = arith.constant 0 : index
      %c0_29 = arith.constant 0 : index
      %48 = vector.load %arg9[%c0_28, %c0_29] : memref<8x1xf32, #tpu.memory_space<vmem>>, vector<8x1xf32>
      tpu.vector_store %arg9[%c0_28, %c0_29], %30 {strides = array<i32>} : memref<8x1xf32, #tpu.memory_space<vmem>>, vector<8x1xf32>,
    } else {
    }
    %c0_i32_6 = arith.constant 0 : i32
    %16 = arith.cmpi eq, %arg2, %c0_i32_6 : i32
    %17 = arith.extui %16 : i1 to i32
    %c0_i32_7 = arith.constant 0 : i32
    %18 = arith.cmpi ne, %17, %c0_i32_7 : i32
    scf.if %18 {
      %c0 = arith.constant 0 : index
      %c0_8 = arith.constant 0 : index
      %19 = vector.load %arg10[%c0, %c0_8] : memref<8x1xf32, #tpu.memory_space<vmem>>, vector<8x1xf32>
      %20 = tpu.reciprocal %19 {approx = true} : vector<8x1xf32> -> vector<8x1xf32>
      %c0_9 = arith.constant 0 : index
      %c0_10 = arith.constant 0 : index
      %21 = vector.load %arg11[%c0_9, %c0_10] : memref<8x16xf32, #tpu.memory_space<vmem>>, vector<8x16xf32>
      %22 = vector.broadcast %20 : vector<8x1xf32> to vector<8x16xf32>
      %23 = arith.mulf %21, %22 : vector<8x16xf32>
      %c0_11 = arith.constant 0 : index
      %c0_12 = arith.constant 0 : index
      %c0_13 = arith.constant 0 : index
      %24 = vector.load %arg7[%c0_11, %c0_12, %c0_13] : memref<1x8x16xf32, #tpu.memory_space<vmem>>, vector<1x8x16xf32>
      %25 = vector.shape_cast %24 : vector<1x8x16xf32> to vector<8x16xf32>
      %26 = vector.shape_cast %23 : vector<8x16xf32> to vector<1x8x16xf32>
      tpu.vector_store %arg7[%c0_11, %c0_12, %c0_13], %26 {strides = array<i32>} : memref<1x8x16xf32, #tpu.memory_space<vmem>>, vector<1x8x16xf32>,
    } else {
    }
    return
  }
  func.func @transform_0(%arg0: i32, %arg1: i32, %arg2: i32) -> (i32, i32, i32) {
    %c0_i32 = arith.constant 0 : i32
    %c0_i32_0 = arith.constant 0 : i32
    return %arg0, %arg1, %c0_i32 : i32, i32, i32
  }
  func.func @transform_1(%arg0: i32, %arg1: i32, %arg2: i32) -> (i32, i32, i32) {
    %c0_i32 = arith.constant 0 : i32
    %c0_i32_0 = arith.constant 0 : i32
    return %arg0, %arg2, %c0_i32 : i32, i32, i32
  }
  func.func @transform_2(%arg0: i32, %arg1: i32, %arg2: i32) -> (i32, i32) {
    %c0_i32 = arith.constant 0 : i32
    %c0_i32_0 = arith.constant 0 : i32
    %c0_i32_1 = arith.constant 0 : i32
    return %c0_i32, %c0_i32_0 : i32, i32
  }
  func.func @transform_3(%arg0: i32, %arg1: i32, %arg2: i32) -> (i32, i32) {
    %c0_i32 = arith.constant 0 : i32
    %c0_i32_0 = arith.constant 0 : i32
    %c0_i32_1 = arith.constant 0 : i32
    return %c0_i32, %c0_i32_0 : i32, i32
  }
  func.func @transform_4(%arg0: i32, %arg1: i32, %arg2: i32) -> (i32, i32, i32) {
    %c0_i32 = arith.constant 0 : i32
    %c0_i32_0 = arith.constant 0 : i32
    return %arg0, %arg1, %c0_i32 : i32, i32, i32
  }
}

</mosaic_0001>

<bundles_post_ra>
// kernel: tpu_custom_call.1
= control target key start
LH: loop header
LB: loop body
LE: loop exit
PB: predicated region body
PF: predicated region fallthrough
CT: control target
= control target key end

     0   :  { %9 = vsyncpa [#allocation7], 0  ;;  %s1571_s0 = inlined_call_operand.vmem [shape: f32[2,8,32], index: 0, kind: input, shape index: {}]   ;;  %s1572_s1 = inlined_call_operand.hbm [shape: f32[2,8,32], index: 1, kind: input, shape index: {}]   ;;  %s1573_s2 = inlined_call_operand.vmem [shape: f32[32,16], index: 2, kind: input, shape index: {}]   ;;  %s1574_s3 = inlined_call_operand.vmem [shape: f32[32,32], index: 3, kind: input, shape index: {}]   ;;  %s1575_s4 = inlined_call_operand.hbm [shape: f32[2,8,16], index: 4, kind: output, shape index: {}]  }
   0x1   :  { %11 = vsyncpa [#allocation7 + $0x1], 0 }
   0x2   :  { %12 = vsyncpa [#allocation8], 0 }
   0x3   :  { %14 = vsyncpa [#allocation8 + $0x1], 0  ;;  %s1346_s15 = smov 0   ;;  %s1348_s16 = smov 0  }
   0x4   :  { %s1350_s17 = smov 0   ;;  %s1352_s18 = smov 0  }
   0x5   :  { %s1354_s19 = smov 0   ;;  %s1356_s20 = smov 0  }
   0x6 LB: > { %s1042_s21 = sadd.s32 4294967295, %s1311_s20   ;;  %s1043_s22 = sadd.s32 4294967294, %s1311_s20   ;;  %s1311_s20 = sphi %s1356_s20, %s20_s20   ;;  %s1307_s19 = sphi %s1354_s19, %s1591_s19   ;;  %s1303_s18 = sphi %s1352_s18, %s1590_s18   ;;  %s1299_s17 = sphi %s1350_s17, %s1589_s17   ;;  %s1295_s16 = sphi %s1348_s16, %s1588_s16   ;;  %s1291_s15 = sphi %s1346_s15, %s1587_s15  }
   0x7   : > { %s39_s23 = sadd.s32 1, %s1307_s19  ;;  %s76_s24 = sadd.s32 1, %s1299_s17 }
   0x8   : > { %p41_p0 = scmp.ge.s32.totalorder %s39_s23, 2  ;;  %p83_p1 = scmp.ne.s32.totalorder %s1299_s17, %s1295_s16 }
   0x9   : > { %p84_p2 = scmp.eq.s32.totalorder %s1311_s20, 0  ;;  %p89_p3 = scmp.ne.s32.totalorder %s1295_s16, %s1291_s15 }
   0xa   : > { %s1593_s23 = smov (%p41_p0, %s39_s23), 0  ;;  %p90_p5 = scmp.eq.s32.totalorder %s1042_s21, 0 }
   0xb   : > { %p1387_p4 = por %p84_p2, %p83_p1  ;;  %s71_s26 = ssub.s32 %s1307_s19, %s1593_s23 }
   0xc   : > { %p157_p6 = scmp.eq.s32.totalorder %s1042_s21, 1  ;;  %p74_p7 = scmp.eq.s32.totalorder %s71_s26, 0 }
   0xd   : > { %p1393_p8 = por %p90_p5, %p89_p3  ;;  %p163_p10 = scmp.eq.s32.totalorder %s1043_s22, 1 }
   0xe   : > { %p1397_p9 = por %p157_p6, %p83_p1  ;;  %p1135_p13 = scmp.lt.s32.totalorder %s1311_s20, 2 }
   0xf   : > { %s1402_s29 = scalar_select %p74_p7, %s1299_s17, %s76_s24  }
  0x10   : > { %s1579_s28 = scalar_select %p1397_p9, 1, 0 }
  0x11   : > { %p1404_p11 = por %p163_p10, %p89_p3  ;;  %s199_s5 = sand.u32 1, %s1299_s17  }
  0x12   : > { %s1046_s6 = sshll.u32 %s199_s5, 3  ;;  %s1047_s7 = sshll.u32 %s1307_s19, 7 }
  0x13   : > { %s1580_s30 = scalar_select %p1404_p11, 1, 0 }
  0x14   : > { %s1415_s10 = scalar_lea.hbm %s1572_s1, %s1047_s7  ;;  %s203_s11 = scalar_lea.vmem [#allocation6], %s1046_s6 }
  0x15   : > { %s211_s12 = sshll.u32 %s203_s11, 4  ;;  %p1421_p0 = pnand %p1135_p13, %p1387_p4  ;;  %s1417_s12 = int_to_ptr.vmem [resolvable:$true] %s211_s12 }
  0x16   : > { %s200_s14 = scalar_lea.sflag [#allocation7], %s199_s5  ;;  %s1199_s21 = scalar_lea.hbm %s1415_s10, 128 }
  0x17   : > { %p1200_p3 = scmp.ne.s32.totalorder %s1415_s10, %s1199_s21  ;;  %p1201_p5 = pneg %p1421_p0 }
  0x18   : > { %s1204_s25 = scalar_lea.hbm %s1572_s1, 256  ;;  %p1205_p4 = scmp.lt.u32.totalorder %s1415_s10, %s1572_s1 }
  0x19   : > { %p1202_p6 = pnand %p1201_p5, %p1200_p3  ;;  %p1206_p10 = scmp.lt.u32.totalorder %s1204_s25, %s1199_s21 }
  0x1a   : > { %p1208_p12 = scmp.lt.u32.totalorder %s1199_s21, %s1415_s10 }
  0x1b   : > { %p1203_p7 = pneg %p1202_p6  ;;  %p1207_p13 = por %p1206_p10, %p1205_p4 }
  0x1d   : > { %p1209_p1 = por %p1208_p12, %p1207_p13 }
  0x1f   : > { %p1210_p2 = pnand %p1209_p1, %p1203_p7 }
  0x21   : > { %1213 = shalt.err (!%p1210_p2)
}
  0x22   : > { %s1214_s5 = scalar_lea.vmem %s1417_s12, 128  ;;  %s1313_s7 = smov [#allocation6]  }
  0x23   : > { %p1215_p3 = scmp.ne.s32.totalorder %s1417_s12, %s1214_s5  ;;  %s1219_s8 = sshll.u32 %s1313_s7, 4  ;;  %s1220_s8 = int_to_ptr.vmem [resolvable:$false] %s1219_s8 }
  0x24   : > { %s1221_s9 = scalar_lea.vmem %s1220_s8, 256  ;;  %p1222_p9 = scmp.lt.s32.totalorder %s1417_s12, %s1220_s8 }
  0x25   : > { %p1217_p6 = pnand %p1215_p3, %p1201_p5  ;;  %p1223_p4 = scmp.lt.s32.totalorder %s1221_s9, %s1214_s5 }
  0x27   : > { %p1218_p11 = pneg %p1217_p6  ;;  %p1224_p10 = por %p1223_p4, %p1222_p9 }
  0x29   : > { %p1225_p12 = pnand %p1224_p10, %p1218_p11 }
  0x2b   : > { %1228 = shalt.err (!%p1225_p12)
}
  0x2c   : > { %1130 = dma.hbm_to_vmem [thread:$0]  (!%p1421_p0), %s1415_s10, 128, %s1417_s12, %s200_s14  }
  0x2d   : > { %p1582_p1 = scmp.lt.s32.totalorder %s1311_s20, 3  ;;  %p1583_p2 = scmp.ge.s32.totalorder %s1311_s20, 1 }
  0x2f   : > { %p217_p5 = pnand %p1583_p2, %p1582_p1 }
  0x30   : > { %s1457_s11 = sand.u32 (!%p217_p5), 1, %s1295_s16  }
  0x31   : > { %220 = sbr.rel (%p217_p5) target bundleno = 1099 (0x44b), region = 36  ;;  %s1049_s21 = sshll.u32 (!%p217_p5), %s1457_s11, 3 }
  0x32   : > { %s223_s22 = scalar_lea.sflag (!%p217_p5), [#allocation7], %s1457_s11  ;;  %s1463_s13 = scalar_lea.vmem (!%p217_p5), [#allocation6], %s1049_s21 }
  0x38   : > { %1282 = dma.done.wait (%p1393_p8), %s223_s22, 128  }
  0x39   : > { %1284 = vsyncadd (%p1393_p8), %s223_s22, 4294967168  ;;  %p258_p9 = scmp.lt.s32.totalorder %s1303_s18, 1  ;;  %v1314_v0 = vmov 0.0|0.0   ;;  %vm1315_vm0 = vmmov 0   ;;  %v1316_v1 = vmov 0.0   ;;  %v272_v2 = vld [vmem:[%s1573_s2] sm:$0xff]  ;;  %v522_v24 = vlaneseq }
  0x3a   : > { %1111 = vmatprep.subr.bf16.mxu0 %v1314_v0  ;;  %1117 = vmatprep.subr.bf16.mxu1 %v1314_v0  ;;  %v273_v3 = vld [vmem:[%s1573_s2 + $0x8] sm:$0xff]  ;;  %v274_v4 = vld [vmem:[%s1573_s2 + $0x10] sm:$0xff]  ;;  %v275_v6 = vld [vmem:[%s1573_s2 + $0x18] sm:$0xff]  ;;  %vm276_vm1 = vcmask 261120   ;;  %vm351_vm2 = vcmask 130048   ;;  %vm353_vm3 = vcmask 7168  }
  0x3b   : > { %1087 = vmatprep.mubr.msk.f32.mxu0 %vm1315_vm0, %v1316_v1  ;;  %1098 = vmatprep.mubr.msk.f32.mxu1 %vm1315_vm0, %v1316_v1  ;;  %s259_s10 = scalar_select %p258_p9, %s1303_s18, 1  ;;  %v1112_v5 = vpack.c.bf16 %v273_v3, %v272_v2  ;;  %v366_v7 = vld [vmem:[%s1574_s3] sm:$0xff]  ;;  %v367_v8 = vld [vmem:[%s1574_s3 + $0x8] sm:$0xff]  ;;  %v368_v10 = vld [vmem:[%s1574_s3 + $0x10] sm:$0xff]  ;;  %v1115_v12 = vpack.c.bf16 %v275_v6, %v274_v4  ;;  %356 = vst.msk [vmem:[#allocation5] sm:$0xff] %vm351_vm2, %v1316_v1  ;;  %v1318_v22 = vmov -inf  }
  0x3c   : > { %v1118_v9 = vpack.c.bf16 %v367_v8, %v366_v7  ;;  %v369_v11 = vld [vmem:[%s1574_s3 + $0x18] sm:$0xff]  ;;  %v365_v15 = vld [vmem:[%s1463_s13] sm:$0xff]  ;;  %354 = vst.msk [vmem:[#allocation3] sm:$0xff] %vm353_vm3, %v1318_v22  ;;  %355 = vst.msk [vmem:[#allocation4] sm:$0xff] %vm353_vm3, %v1316_v1  ;;  %v523_v25 = vshrl.u32 %v522_v24, 7  ;;  %v527_v26 = vand.u32 127, %v522_v24 }
  0x3d   : > { %s1051_s12 = sshll.u32 %s259_s10, 3  ;;  %1113 = vmatpush3.bf16.msra.mxu0 %v1112_v5  ;;  %v1121_v13 = vpack.c.bf16 %v369_v11, %v368_v10  ;;  %s1317_s10 = smov 112   ;;  %vm533_vm5 = vcmask 64512   ;;  %v1319_v31 = vmov 0  }
  0x3e   : > { %1114 = vmatprep.subr.bf16.mxu0 %v1314_v0  ;;  %1119 = vmatpush3.bf16.msra.mxu1 %v1118_v9  ;;  %s264_s5 = scalar_lea.vmem %s1571_s0, %s1051_s12  ;;  %vm530_vm4 = vcmp.le.s32.totalorder %v527_v26, %v523_v25  ;;  %s1062_s13 = sshll.u32 %s1303_s18, 7 }
  0x3f   : > { %1120 = vmatprep.subr.bf16.mxu1 %v1314_v0  ;;  %v271_v14 = vld [vmem:[%s264_s5] sm:$0xff]  ;;  %1191 = vset.pattern.permute.xlu0 %v1319_v31  ;;  %s257_s7 = scalar_lea.vmem [#allocation9], %s1049_s21  ;;  %s1521_s12 = scalar_lea.hbm %s1575_s4, %s1062_s13 }
  0x40   : > { %1192 = vset.pattern.permute.xlu1 %v1319_v31  ;;  %s944_s8 = sshll.u32 %s257_s7, 4  ;;  %s930_s14 = scalar_lea.sflag [#allocation8], %s1457_s11  ;;  %s1523_s8 = int_to_ptr.vmem [resolvable:$true] %s944_s8 }
  0x41   : > { %1116 = vmatpush3.bf16.msra.mxu0 %v1115_v12  ;;  %s1229_s18 = scalar_lea.vmem %s1523_s8, 128  ;;  %p1584_p11 = scmp.ne.s32.totalorder %s1579_s28, 0 }
  0x42   : > { %1122 = vmatpush3.bf16.msra.mxu1 %v1121_v13  ;;  %1101 = vmatprep.subr.mxu0 %v1316_v1  ;;  %v557_v49 = vld [vmem:[#allocation5] sm:$0xff]  ;;  %p1230_p8 = scmp.ne.s32.totalorder %s1523_s8, %s1229_s18  ;;  %s1320_s21 = smov [#allocation9]  }
  0x43   : > { %1106 = vmatprep.subr.mxu1 %v1316_v1  ;;  %v532_v32 = vld [vmem:[#allocation3] sm:$0xff]  ;;  %v549_v43 = vld [vmem:[#allocation4] sm:$0xff]  ;;  %s1233_s24 = sshll.u32 %s1320_s21, 4  ;;  %s1234_s24 = int_to_ptr.vmem [resolvable:$false] %s1233_s24 }
  0x44   : > { %1088 = vmatmul.mubr.msk.f32.vlgmr.msra.gmra.mrb[0].mxu0 %vm276_vm1, %v271_v14  ;;  %p1231_p0 = pnand %p1230_p8, %p1584_p11  ;;  %s1235_s27 = scalar_lea.vmem %s1234_s24, 256 }
  0x45   : > { %1099 = vmatmul.mubr.msk.f32.vlgmr.msra.gmra.mrb[0].mxu1 %vm276_vm1, %v365_v15  ;;  %1103 = vmatprep.mubr.msk.f32.mxu0 %vm1315_vm0, %v1316_v1  ;;  %p1236_p13 = scmp.lt.s32.totalorder %s1523_s8, %s1234_s24  ;;  %p1237_p3 = scmp.lt.s32.totalorder %s1235_s27, %s1229_s18 }
  0x46   : > { %1108 = vmatprep.mubr.msk.f32.mxu1 %vm1315_vm0, %v1316_v1  ;;  %p1232_p7 = pneg %p1231_p0 }
  0x47   : > { %p1238_p6 = por %p1237_p3, %p1236_p13 }
  0x49   : > { %p1239_p4 = pnand %p1238_p6, %p1232_p7 }
 0x117   : > { %v346_v16 = vpop.f32.mrb[0].mxu0 }
 0x118   : > { %v350_v17 = vmul.f32 0.17677669, %v346_v16  ;;  %v1089_v18 = vpop.f32.mrb[1].mxu0  ;;  %v440_v19 = vpop.f32.mrb[0].mxu1 }
 0x119   : > { %v1100_v20 = vpop.f32.mrb[1].mxu1  ;;  %564 = vrot.lane.b32.xlu1 %v440_v19, %s1317_s10  ;;  %1102 = vmatpush3.xpose.msk.msra.mxu0 %vm351_vm2, %v440_v19 }
 0x11a   : > { %352 = vst.msk [vmem:[#allocation2] sm:$0xff] %vm351_vm2, %v350_v17 }
 0x121   : > { %v444_v21 = vld [vmem:[#allocation2] sm:$0xff] }
 0x122   : > { %1104 = vmatmul.mubr.msk.f32.vlgmr.msra.gmra.mrb[2].mxu0 %vm351_vm2, %v444_v21 }
 0x18b   : > { %v565_v23 = vpop.permute.xlu1 %564 }
 0x18c   : > { %1107 = vmatpush3.msra.mxu1 %v565_v23 }
 0x1f5   : > { %v518_v27 = vpop.f32.mrb[2].mxu0 }
 0x1f6   : > { %v531_v28 = vsel %vm530_vm4, %v518_v27, -inf  ;;  %v1105_v29 = vpop.f32.mrb[3].mxu0 }
 0x1f7   : > { %v534_v30 = vsel %vm533_vm5, %v531_v28, -inf }
 0x1f8   : > { %535 = vmax.xlane.f32.xlu0 %v534_v30 }
 0x285   : > { %v536_v33 = vpop.xlane.xlu0 %535 }
 0x286   : > { %v537_v34 = vmax.f32 %v532_v32, %v536_v33 }
 0x288   : > { %v538_v35 = vsub.f32 %v532_v32, %v537_v34  ;;  %642 = vst.msk [vmem:[#allocation3] sm:$0xff] %vm353_vm3, %v537_v34  ;;  %543 = vperm.xlu0 %1191, %v537_v34  }
 0x28a   : > { %v539_v41 = vmul.f32 1.442695, %v538_v35 }
 0x307   : > { %v544_v36 = vpop.permute.xlu0 %543 }
 0x308   : > { %v546_v37 = vsub.f32 %v531_v28, %v544_v36 }
 0x30a   : > { %v547_v38 = vmul.f32 1.442695, %v546_v37 }
 0x30c   : > { %1193 = vpow2.f32 %v547_v38 }
 0x30d   : > { %1195 = vpow2.f32 %v539_v41 }
 0x316   : > { %v1194_v39 = vpop.eup %1193 }
 0x317   : > { %1109 = vmatmul.mubr.msk.f32.vlgmr.msra.gmra.mrb[2].mxu1 %vm533_vm5, %v1194_v39  ;;  %v551_v40 = vsel %vm533_vm5, %v1194_v39, 0.0  ;;  %v1196_v42 = vpop.eup %1195 }
 0x318   : > { %552 = vadd.xlane.f32.xlu1 %v551_v40  ;;  %v550_v44 = vmul.f32 %v1196_v42, %v549_v43 }
 0x329   : > { %560 = vperm.xlu1 %1192, %v1196_v42  }
 0x3a5   : > { %v553_v45 = vpop.xlane.xlu1 %552 }
 0x3a6   : > { %v554_v46 = vadd.f32 %v553_v45, %v550_v44 }
 0x3a8   : > { %556 = vst.msk [vmem:[#allocation4] sm:$0xff] %vm353_vm3, %v554_v46 }
 0x3a9   : > { %v561_v50 = vpop.permute.xlu1 %560 }
 0x3aa   : > { %v563_v51 = vmul.f32 %v561_v50, %v557_v49 }
 0x3af   : > { %v918_v47 = vld [vmem:[#allocation4] sm:$0xff] }
 0x3b0   : > { %1197 = vrcp.f32 %v918_v47 }
 0x3ba   : > { %v1198_v48 = vpop.eup %1197 }
 0x3bb   : > { %923 = vperm.xlu0 %1191, %v1198_v48  }
 0x3ea   : > { %v636_v52 = vpop.f32.mrb[2].mxu1 }
 0x3eb   : > { %v640_v53 = vadd.f32 %v636_v52, %v563_v51  ;;  %v1110_v54 = vpop.f32.mrb[3].mxu1 }
 0x3ed   : > { %641 = vst.msk [vmem:[#allocation5] sm:$0xff] %vm351_vm2, %v640_v53 }
 0x3f4   : > { %v920_v55 = vld [vmem:[#allocation5] sm:$0xff] }
 0x43a   : > { %v924_v56 = vpop.permute.xlu0 %923 }
 0x43b   : > { %v926_v57 = vmul.f32 %v924_v56, %v920_v55 }
 0x43d   : > { %928 = vst.msk [vmem:[%s257_s7] sm:$0xff] %vm351_vm2, %v926_v57 }
 0x43e   : > { %1242 = shalt.err (!%p1239_p4)
}
 0x43f   : > { %s1243_s11 = scalar_lea.hbm %s1521_s12, 128  ;;  %s1247_s6 = scalar_lea.hbm %s1575_s4, 256 }
 0x440   : > { %p1244_p10 = scmp.ne.s32.totalorder %s1521_s12, %s1243_s11  ;;  %p1248_p2 = scmp.lt.u32.totalorder %s1521_s12, %s1575_s4 }
 0x441   : > { %p1249_p5 = scmp.lt.u32.totalorder %s1247_s6, %s1243_s11  ;;  %p1251_p8 = scmp.lt.u32.totalorder %s1243_s11, %s1521_s12 }
 0x442   : > { %p1245_p12 = pnand %p1244_p10, %p1584_p11 }
 0x443   : > { %p1250_p9 = por %p1249_p5, %p1248_p2 }
 0x444   : > { %p1246_p1 = pneg %p1245_p12 }
 0x445   : > { %p1252_p0 = por %p1251_p8, %p1250_p9 }
 0x447   : > { %p1253_p7 = pnand %p1252_p0, %p1246_p1 }
 0x449   : > { %1256 = shalt.err (!%p1253_p7)
}
 0x44a   : > { %1125 = dma.vmem_to_hbm [thread:$0]  (%p1584_p11), %s1523_s8, 128, %s1521_s12, %s930_s14  }
 0x44b PF: > { %s956_s13 = sand.u32 1, %s1291_s15   ;;  %p1585_p13 = scmp.ne.s32.totalorder %s1580_s30, 0 }
 0x44c   : > { %p1586_p3 = scmp.ge.s32.totalorder %s1311_s20, 2  ;;  %s957_s7 = scalar_lea.sflag [#allocation8], %s956_s13 }
 0x44e   : > { %p1132_p6 = pnand %p1586_p3, %p1585_p13 }
 0x450   : > { %1286 = dma.done.wait (!%p1132_p6), %s957_s7, 128  }
 0x451   : > { %1288 = vsyncadd (!%p1132_p6), %s957_s7, 4294967168  ;;  %s20_s20 = sadd.s32 1, %s1311_s20   ;;  %s1587_s15 = smov %s1295_s16 }
 0x452   : > { %p17_p4 = scmp.ge.s32.totalorder %s20_s20, 4   ;;  %s1588_s16 = smov %s1299_s17 }
 0x453   : > { %s1589_s17 = smov %s1402_s29  ;;  %s1590_s18 = smov %s1307_s19 }
 0x454   : > { %s1591_s19 = smov %s1593_s23  ;;  %19 = sbr.rel (!%p17_p4) target bundleno = 6 (0x6), region = 100 }
 0x45b   :  { %962 = vsyncpa [#allocation7], 1 }
 0x45c   :  { %964 = vsyncpa [#allocation7 + $0x1], 1 }
 0x45d   :  { %965 = vsyncpa [#allocation8], 1 }
 0x45e   :  { %967 = vsyncpa [#allocation8 + $0x1], 1 }

</bundles_post_ra>
